<compile_context>
chip_gen: v7x
topology: tpu7x:2x2x1
jax: 0.10.0
libtpu: 0.0.40
codegen_flags: <defaults>
</compile_context>

<pallas_src>
import jax
import jax.numpy as jnp
from jax.experimental import pallas as pl
from jax.experimental.pallas import tpu as pltpu

_MIB = 1024 * 1024
_DEFAULT_VMEM_PLAN = 40 * _MIB   # double-buffered footprint target (v7x-safe)
_VMEM_LIMIT_BYTES = 48 * _MIB    # > v5e 16 MiB scoped default, < v7x 64 MiB physical


def _round_up(x: int, m: int) -> int:
    return ((x + m - 1) // m) * m


def _sublane_align(dtype) -> int:
    """Rows per packed sublane group: f32 -> 8, bf16 -> 16, int8/fp8 -> 32."""
    return 8 * max(1, 4 // jnp.dtype(dtype).itemsize)


# ----------------------------- kernels ---------------------------------------------


def _linear_kernel(x_ref, w_ref, o_ref):
    # Full-K tile: single MXU pass (f32 accumulation inside the MXU), one epilogue cast.
    o_ref[...] = jnp.dot(
        x_ref[...], w_ref[...], preferred_element_type=jnp.float32
    ).astype(o_ref.dtype)


def _linear_acc_kernel(x_ref, w_ref, o_ref, acc_ref):
    # K-tiled path: f32 VMEM accumulator, init at k==0, single cast/store at last k.
    @pl.when(pl.program_id(2) == 0)
    def _init():
        acc_ref[...] = jnp.zeros_like(acc_ref)

    acc_ref[...] += jnp.dot(x_ref[...], w_ref[...], preferred_element_type=jnp.float32)

    @pl.when(pl.program_id(2) == pl.num_programs(2) - 1)
    def _store():
        o_ref[...] = acc_ref[...].astype(o_ref.dtype)


# ----------------------------- parameter helpers -----------------------------------


def make_linear_weight(in_dim: int, identity_init: bool = True, key=None,
                       dtype=jnp.float32) -> jax.Array:
    """PyTorch-layout (out, in) parameter matching the module's __init__."""
    if identity_init:
        return jnp.eye(in_dim, dtype=dtype)
    assert key is not None
    return (jax.random.normal(key, (in_dim, in_dim), dtype=jnp.float32)
            * (in_dim ** -0.5)).astype(dtype)


def prepare_linear_weight(w_out_in: jax.Array, compute_dtype=None) -> jax.Array:
    """One-time weight prep (do this at parameter-creation time, not per forward):
    transpose PyTorch (out, in) -> (in, out) for a straight MXU feed, and optionally
    cast to the compute dtype (bf16 compute is an explicit precision choice)."""
    w_t = jnp.asarray(w_out_in).T
    if compute_dtype is not None:
        w_t = w_t.astype(compute_dtype)
    return w_t


# ----------------------------- forward ---------------------------------------------


def linear_forward(x: jax.Array, w_t: jax.Array, *, block_m: int | None = None,
                   block_n: int | None = None, block_k: int | None = None,
                   vmem_plan_bytes: int = _DEFAULT_VMEM_PLAN) -> jax.Array:
    """y = x @ w_t over the last axis of x; `w_t` is the pre-transposed (in, out)
    weight from prepare_linear_weight (PyTorch y = x @ W.T semantics, no bias)."""
    orig_shape = x.shape
    K = orig_shape[-1]
    assert w_t.shape[0] == K, f"w_t must be (in_dim, out_dim); got {w_t.shape}"
    N = w_t.shape[1]

    if w_t.dtype != x.dtype:
        # Fallback only; prefer casting once in prepare_linear_weight.
        w_t = w_t.astype(x.dtype)

    x2 = x.reshape(-1, K)
    M = x2.shape[0]
    isz = jnp.dtype(x.dtype).itemsize
    m_align = _sublane_align(x.dtype)

    Kp0 = _round_up(K, 128)
    Np0 = _round_up(N, 128)

    # ---- tile / path selection ----
    tm = (min(512, _round_up(M, m_align)) if block_m is None
          else min(_round_up(block_m, m_align), _round_up(M, m_align)))

    def fits(tm_, tn_, tk_, acc):
        buf = 2 * (tm_ * tk_ + tk_ * tn_ + tm_ * tn_) * isz  # double-buffered plan
        if acc:
            buf += tm_ * tn_ * 4
        return buf <= vmem_plan_bytes

    if block_n is not None or block_k is not None:
        # Explicit override: honor it and pick the matching path.
        tn = Np0 if block_n is None else min(_round_up(block_n, 128), Np0)
        tk = Kp0 if block_k is None else min(_round_up(block_k, 128), Kp0)
        path = "C" if tk < Kp0 else ("B" if tn < Np0 else "A")
    elif fits(tm, Np0, Kp0, acc=False):
        path, tn, tk = "A", Np0, Kp0              # weight resident, 1-D grid over M
    else:
        path = None
        tn = tk = None
        for tn_try in (512, 256, 128):            # full-K, stream W panels over N
            tn_c = min(tn_try, Np0)
            if fits(tm, tn_c, Kp0, acc=False):
                path, tn, tk = "B", tn_c, Kp0
                break
        if path is None:
            path = "C"                            # K-tiled with f32 accumulator
            tn = min(512, Np0)
            tk = min(1024 if isz <= 2 else 512, Kp0)

    Mp = _round_up(M, tm)
    Np = _round_up(Np0, tn)
    Kp = _round_up(Kp0, tk)

    if (Mp, Kp) != (M, K):
        x2 = jnp.pad(x2, ((0, Mp - M), (0, Kp - K)))
    if (Kp, Np) != (K, N):
        w_t = jnp.pad(w_t, ((0, Kp - K), (0, Np - N)))

    gm, gn, gk = Mp // tm, Np // tn, Kp // tk

    if path == "A":
        grid = (gm,)
        in_specs = [
            pl.BlockSpec((tm, Kp), lambda i: (i, 0)),
            pl.BlockSpec((Kp, Np), lambda i: (0, 0)),   # resident: DMA'd once
        ]
        out_specs = pl.BlockSpec((tm, Np), lambda i: (i, 0))
        kernel, scratch = _linear_kernel, []
        semantics = ("parallel",)
        bytes_accessed = (Mp * Kp + Kp * Np + Mp * Np) * isz
    elif path == "B":
        grid = (gm, gn)
        in_specs = [
            pl.BlockSpec((tm, Kp), lambda i, j: (i, 0)),
            pl.BlockSpec((Kp, tn), lambda i, j: (0, j)),
        ]
        out_specs = pl.BlockSpec((tm, tn), lambda i, j: (i, j))
        kernel, scratch = _linear_kernel, []
        semantics = ("parallel", "parallel")
        bytes_accessed = (Mp * Kp * gn + Kp * Np * gm + Mp * Np) * isz
    else:  # path == "C"
        grid = (gm, gn, gk)                      # K last: output block resident across K
        in_specs = [
            pl.BlockSpec((tm, tk), lambda i, j, k: (i, k)),
            pl.BlockSpec((tk, tn), lambda i, j, k: (k, j)),
        ]
        out_specs = pl.BlockSpec((tm, tn), lambda i, j, k: (i, j))
        kernel = _linear_acc_kernel
        scratch = [pltpu.VMEM((tm, tn), jnp.float32)]
        semantics = ("parallel", "parallel", "arbitrary")
        bytes_accessed = (Mp * Kp * gn + Kp * Np * gm + Mp * Np) * isz

    out = pl.pallas_call(
        kernel,
        out_shape=jax.ShapeDtypeStruct((Mp, Np), x.dtype),
        grid_spec=pltpu.PrefetchScalarGridSpec(
            num_scalar_prefetch=0,
            grid=grid,
            in_specs=in_specs,
            out_specs=out_specs,
            scratch_shapes=scratch,
        ),
        compiler_params=pltpu.CompilerParams(
            dimension_semantics=semantics,
            vmem_limit_bytes=_VMEM_LIMIT_BYTES,
        ),
        cost_estimate=pl.CostEstimate(
            flops=2 * Mp * Np * Kp,
            transcendentals=0,
            bytes_accessed=bytes_accessed,
        ),
    )(x2, w_t)

    return out[:M, :N].reshape(*orig_shape[:-1], N)


# ----------------------------- self-test --------------------------------------------

if __name__ == "__main__":
    key = jax.random.PRNGKey(0)
    k_x, k_w, k_x2, k_w2 = jax.random.split(key, 4)

    # Small shapes consistent with the module.
    batch, seq, in_dim = 2, 8, 32
    x = jax.random.normal(k_x, (batch, seq, in_dim), dtype=jnp.float32)

    # identity_init=True (module default): output equals input. (weight-resident path A)
    w_id = make_linear_weight(in_dim, identity_init=True)
    wt_id = prepare_linear_weight(w_id)
    y_id = jax.block_until_ready(linear_forward(x, wt_id))
    assert jnp.allclose(y_id, x, atol=1e-5), "identity-init Linear should be a no-op"

    # identity_init=False: compare against plain JAX reference.
    w_rand = make_linear_weight(in_dim, identity_init=False, key=k_w)
    wt_rand = prepare_linear_weight(w_rand)
    y_rand = jax.block_until_ready(linear_forward(x, wt_rand))
    y_ref = x @ w_rand.T
    assert jnp.allclose(y_rand, y_ref, atol=1e-4, rtol=1e-4), "mismatch vs reference (f32)"

    # bf16 MXU-native compute (explicit one-time weight cast; f32 accumulation inside).
    xb = x.astype(jnp.bfloat16)
    wtb = prepare_linear_weight(w_rand, compute_dtype=jnp.bfloat16)
    yb = jax.block_until_ready(linear_forward(xb, wtb))
    yb_ref = xb.astype(jnp.float32) @ wtb.astype(jnp.float32)
    assert jnp.allclose(yb.astype(jnp.float32), yb_ref, atol=2e-2, rtol=2e-2), \
        "mismatch vs reference (bf16)"

    # Exercise the K-tiled 3-D accumulator path (C) with explicit small tiles.
    in_dim2 = 256
    x3 = jax.random.normal(k_x2, (2, 8, in_dim2), dtype=jnp.float32)
    w3 = make_linear_weight(in_dim2, identity_init=False, key=k_w2)
    wt3 = prepare_linear_weight(w3)
    y3 = jax.block_until_ready(
        linear_forward(x3, wt3, block_m=8, block_n=128, block_k=128))
    y3_ref = x3 @ w3.T
    assert jnp.allclose(y3, y3_ref, atol=1e-3, rtol=1e-3), "mismatch vs reference (3D tiled)"

    # Exercise the full-K streaming 2-D path (B) by shrinking the VMEM plan budget.
    y4 = jax.block_until_ready(
        linear_forward(x3, wt3, vmem_plan_bytes=400 * 1024))
    assert jnp.allclose(y4, y3_ref, atol=1e-3, rtol=1e-3), "mismatch vs reference (2D panel)"

    print("KERNEL_OK")
</pallas_src>

<mosaic_0001>
module attributes {stable_mosaic.version = 11 : i64} {
  func.func @_linear_kernel(%arg0: i32, %arg1: memref<16x128xf32, #tpu.memory_space<vmem>>, %arg2: memref<128x128xf32, #tpu.memory_space<vmem>>, %arg3: memref<16x128xf32, #tpu.memory_space<vmem>>) attributes {dimension_semantics = [#tpu.dimension_semantics<parallel>], iteration_bounds = array<i64: 1>, scalar_prefetch = 0 : i64, scratch_operands = 0 : i64, tpu.core_type = #tpu.core_type<tc>, window_params = [{transform_indices = @transform_0, window_bounds = array<i64: 16, 128>}, {pipeline_mode = #tpu.pipeline_mode<synchronous>, transform_indices = @transform_1, window_bounds = array<i64: 128, 128>}, {transform_indices = @transform_2, window_bounds = array<i64: 16, 128>}]} {
    %c0 = arith.constant 0 : index
    %c0_0 = arith.constant 0 : index
    %0 = vector.load %arg1[%c0, %c0_0] : memref<16x128xf32, #tpu.memory_space<vmem>>, vector<16x128xf32>
    %c0_1 = arith.constant 0 : index
    %c0_2 = arith.constant 0 : index
    %1 = vector.load %arg2[%c0_1, %c0_2] : memref<128x128xf32, #tpu.memory_space<vmem>>, vector<128x128xf32>
    %cst = arith.constant dense<0.000000e+00> : vector<16x128xf32>
    %2 = tpu.matmul %0, %1, %cst {dimension_numbers = #tpu.dot_dimension_numbers<[1], [0], [0], [1], [0, 0, 1, 1], [], []>} : vector<16x128xf32>, vector<128x128xf32>, vector<16x128xf32> -> vector<16x128xf32>
    %c0_3 = arith.constant 0 : index
    %c0_4 = arith.constant 0 : index
    %3 = vector.load %arg3[%c0_3, %c0_4] : memref<16x128xf32, #tpu.memory_space<vmem>>, vector<16x128xf32>
    tpu.vector_store %arg3[%c0_3, %c0_4], %2 {strides = array<i32>} : memref<16x128xf32, #tpu.memory_space<vmem>>, vector<16x128xf32>,
    return
  }
  func.func @transform_0(%arg0: i32) -> (i32, i32) {
    %c0_i32 = arith.constant 0 : i32
    %c0_i32_0 = arith.constant 0 : i32
    return %arg0, %c0_i32 : i32, i32
  }
  func.func @transform_1(%arg0: i32) -> (i32, i32) {
    %c0_i32 = arith.constant 0 : i32
    %c0_i32_0 = arith.constant 0 : i32
    %c0_i32_1 = arith.constant 0 : i32
    return %c0_i32, %c0_i32_0 : i32, i32
  }
  func.func @transform_2(%arg0: i32) -> (i32, i32) {
    %c0_i32 = arith.constant 0 : i32
    %c0_i32_0 = arith.constant 0 : i32
    return %arg0, %c0_i32 : i32, i32
  }
}

</mosaic_0001>

<bundles_post_ra>
// kernel: tpu_custom_call.1
= control target key start
LH: loop header
LB: loop body
LE: loop exit
PB: predicated region body
PF: predicated region fallthrough
CT: control target
= control target key end

     0   :  { %7 = vsyncpa [#allocation3], 0  ;;  %s380_s0 = inlined_call_operand.hbm [shape: f32[16,128], index: 0, kind: input, shape index: {}]   ;;  %s381_s1 = inlined_call_operand.hbm [shape: f32[128,128], index: 1, kind: input, shape index: {}]   ;;  %s382_s2 = inlined_call_operand.hbm [shape: f32[16,128], index: 2, kind: output, shape index: {}]  }
   0x1   :  { %8 = vsyncpa [#allocation6], 0 }
   0x2   :  { %9 = vsyncpa [#allocation4], 0  ;;  %s315_s9 = smov [#allocation2]   ;;  %s243_s13 = scalar_lea.hbm %s380_s0, 256 }
   0x3   :  { %s15_s10 = sshll.u32 %s315_s9, 4  ;;  %p244_p0 = scmp.ne.s32.totalorder %s380_s0, %s243_s13  ;;  %s16_s10 = int_to_ptr.vmem [resolvable:$true] %s15_s10 }
   0x4   :  { %p247_p1 = scmp.lt.u32.totalorder %s243_s13, %s380_s0 }
   0x6   :  { %p249_p2 = pnand %p247_p1, %p244_p0 }
   0x8   :  { %252 = shalt.err (!%p249_p2)
}
   0x9   :  { %s253_s18 = scalar_lea.vmem %s16_s10, 256  ;;  %p258_p4 = scmp.lt.s32.totalorder %s16_s10, %s16_s10 }
   0xa   :  { %p254_p3 = scmp.ne.s32.totalorder %s16_s10, %s253_s18  ;;  %p259_p5 = scmp.lt.s32.totalorder %s253_s18, %s253_s18 }
   0xc   :  { %p260_p6 = por %p259_p5, %p258_p4 }
   0xe   :  { %p261_p7 = pnand %p260_p6, %p254_p3 }
  0x10   :  { %264 = shalt.err (!%p261_p7)
}
  0x11   :  { %s316_s19 = smov 128   ;;  %s317_s20 = smov 8  }
  0x12   :  { %21 = dma.hbm_to_vmem [thread:$0]  %s380_s0, 256, %s16_s10, [#allocation3], %s316_s19, %s316_s19, %s317_s20  }
  0x13   :  { %s318_s23 = smov [#allocation5]   ;;  %s265_s27 = scalar_lea.hbm %s381_s1, 2048 }
  0x14   :  { %s27_s24 = sshll.u32 %s318_s23, 4  ;;  %p266_p8 = scmp.ne.s32.totalorder %s381_s1, %s265_s27  ;;  %s28_s24 = int_to_ptr.vmem [resolvable:$true] %s27_s24 }
  0x15   :  { %p269_p9 = scmp.lt.u32.totalorder %s265_s27, %s381_s1 }
  0x17   :  { %p271_p10 = pnand %p269_p9, %p266_p8 }
  0x19   :  { %274 = shalt.err (!%p271_p10)
}
  0x1a   :  { %s275_s4 = scalar_lea.vmem %s28_s24, 2048  ;;  %p280_p12 = scmp.lt.s32.totalorder %s28_s24, %s28_s24 }
  0x1b   :  { %p276_p11 = scmp.ne.s32.totalorder %s28_s24, %s275_s4  ;;  %p281_p13 = scmp.lt.s32.totalorder %s275_s4, %s275_s4 }
  0x1d   :  { %p282_p0 = por %p281_p13, %p280_p12 }
  0x1f   :  { %p283_p1 = pnand %p282_p0, %p276_p11 }
  0x21   :  { %286 = shalt.err (!%p283_p1)
}
  0x22   :  { %33 = dma.hbm_to_vmem [thread:$0]  %s381_s1, 2048, %s28_s24, [#allocation6], %s316_s19, %s316_s19, %s317_s20  }
  0x23   :  { %309 = dma.done.wait [#allocation3], 256  }
  0x24   :  { %310 = vsyncadd [#allocation3], 4294967040 }
  0x25   :  { %311 = dma.done.wait [#allocation6], 2048  }
  0x26   :  { %312 = vsyncadd [#allocation6], 4294965248  ;;  %v42_v0 = vld [vmem:[#allocation5] sm:$0xff]  ;;  %v43_v1 = vld [vmem:[#allocation5 + $0x8] sm:$0xff]  ;;  %s319_s1 = smov [#allocation7]  }
  0x27   :  { %v44_v2 = vld [vmem:[#allocation5 + $0x10] sm:$0xff]  ;;  %v206_v3 = vpack.c.bf16 %v43_v1, %v42_v0  ;;  %v45_v4 = vld [vmem:[#allocation5 + $0x18] sm:$0xff]  ;;  %v46_v6 = vld [vmem:[#allocation5 + $0x20] sm:$0xff]  ;;  %s140_s6 = sshll.u32 %s319_s1, 4  ;;  %s141_s6 = int_to_ptr.vmem [resolvable:$true] %s140_s6 }
  0x28   :  { %v210_v5 = vpack.c.bf16 %v45_v4, %v44_v2  ;;  %v47_v7 = vld [vmem:[#allocation5 + $0x28] sm:$0xff]  ;;  %v40_v9 = vld [vmem:[#allocation2] sm:$0xff]  ;;  %v49_v11 = vld [vmem:[#allocation5 + $0x38] sm:$0xff]  ;;  %s287_s7 = scalar_lea.vmem %s141_s6, 256  ;;  %p292_p3 = scmp.lt.s32.totalorder %s141_s6, %s141_s6 }
  0x29   :  { %207 = vmatprep.subr.bf16.mxu0 %v206_v3  ;;  %v214_v8 = vpack.c.bf16 %v47_v7, %v46_v6  ;;  %v48_v10 = vld [vmem:[#allocation5 + $0x30] sm:$0xff]  ;;  %203 = vmatprep.mubr.f32.mxu0 %v40_v9  ;;  %v50_v13 = vld [vmem:[#allocation5 + $0x40] sm:$0xff]  ;;  %v51_v14 = vld [vmem:[#allocation5 + $0x48] sm:$0xff]  ;;  %p288_p2 = scmp.ne.s32.totalorder %s141_s6, %s287_s7  ;;  %p293_p4 = scmp.lt.s32.totalorder %s287_s7, %s287_s7 }
  0x2a   :  { %209 = vmatpush3.bf16.msra.mxu0 %v206_v3  ;;  %v218_v12 = vpack.c.bf16 %v49_v11, %v48_v10  ;;  %v222_v15 = vpack.c.bf16 %v51_v14, %v50_v13  ;;  %v52_v16 = vld [vmem:[#allocation5 + $0x50] sm:$0xff]  ;;  %v53_v17 = vld [vmem:[#allocation5 + $0x58] sm:$0xff]  ;;  %v54_v19 = vld [vmem:[#allocation5 + $0x60] sm:$0xff] }
  0x2b   :  { %211 = vmatprep.subr.bf16.mxu0 %v210_v5  ;;  %v226_v18 = vpack.c.bf16 %v53_v17, %v52_v16  ;;  %v55_v20 = vld [vmem:[#allocation5 + $0x68] sm:$0xff]  ;;  %v56_v22 = vld [vmem:[#allocation5 + $0x70] sm:$0xff]  ;;  %v57_v23 = vld [vmem:[#allocation5 + $0x78] sm:$0xff]  ;;  %p294_p5 = por %p293_p4, %p292_p3 }
  0x2c   :  { %v230_v21 = vpack.c.bf16 %v55_v20, %v54_v19  ;;  %v234_v24 = vpack.c.bf16 %v57_v23, %v56_v22  ;;  %v41_v25 = vld [vmem:[#allocation2 + $0x8] sm:$0xff] }
  0x2d   :  { %p295_p6 = pnand %p294_p5, %p288_p2 }
  0x2e   :  { %213 = vmatpush3.bf16.msra.mxu0 %v210_v5 }
  0x2f   :  { %215 = vmatprep.subr.bf16.mxu0 %v214_v8 }
  0x32   :  { %217 = vmatpush3.bf16.msra.mxu0 %v214_v8 }
  0x33   :  { %219 = vmatprep.subr.bf16.mxu0 %v218_v12 }
  0x36   :  { %221 = vmatpush3.bf16.msra.mxu0 %v218_v12 }
  0x37   :  { %223 = vmatprep.subr.bf16.mxu0 %v222_v15 }
  0x3a   :  { %225 = vmatpush3.bf16.msra.mxu0 %v222_v15 }
  0x3b   :  { %227 = vmatprep.subr.bf16.mxu0 %v226_v18 }
  0x3e   :  { %229 = vmatpush3.bf16.msra.mxu0 %v226_v18 }
  0x3f   :  { %231 = vmatprep.subr.bf16.mxu0 %v230_v21 }
  0x42   :  { %233 = vmatpush3.bf16.msra.mxu0 %v230_v21 }
  0x43   :  { %235 = vmatprep.subr.bf16.mxu0 %v234_v24 }
  0x46   :  { %237 = vmatpush3.bf16.msra.mxu0 %v234_v24 }
  0x49   :  { %204 = vmatmul.mubr.f32.vlgmr.msra.gmra.mrb[0].mxu0 %v41_v25 }
 0x11c   :  { %v205_v26 = vpop.f32.mrb[0].mxu0 }
 0x11d   :  { %134 = vst [vmem:[#allocation7 + $0x8] sm:$0xff] %v205_v26  ;;  %v124_v27 = vpop.f32.mrb[1].mxu0 }
 0x11e   :  { %133 = vst [vmem:[#allocation7] sm:$0xff] %v124_v27 }
 0x11f   :  { %298 = shalt.err (!%p295_p6)
}
 0x120   :  { %s299_s10 = scalar_lea.hbm %s382_s2, 256 }
 0x121   :  { %p300_p7 = scmp.ne.s32.totalorder %s382_s2, %s299_s10  ;;  %p303_p8 = scmp.lt.u32.totalorder %s299_s10, %s382_s2 }
 0x123   :  { %p305_p9 = pnand %p303_p8, %p300_p7 }
 0x125   :  { %308 = shalt.err (!%p305_p9)
}
 0x126   :  { %146 = dma.vmem_to_hbm [thread:$0]  %s141_s6, 256, %s382_s2, [#allocation4], %s316_s19, %s316_s19, %s317_s20  }
 0x127   :  { %313 = dma.done.wait [#allocation4], 256  }
 0x128   :  { %314 = vsyncadd [#allocation4], 4294967040 }
 0x129   :  { %150 = vsyncpa [#allocation3], 1 }
 0x12a   :  { %151 = vsyncpa [#allocation6], 1 }
 0x12b   :  { %152 = vsyncpa [#allocation4], 1 }

</bundles_post_ra>
